<compile_context>
chip_gen: v7x
topology: tpu7x:2x2x1
jax: 0.10.0
libtpu: 0.0.40
codegen_flags: <defaults>
</compile_context>

<pallas_src>
import functools

import jax
import jax.numpy as jnp
import numpy as np
from jax.experimental import pallas as pl
from jax.experimental.pallas import tpu as pltpu

_LANES = 128
_SUBLANES = 8
_EARTH_RADIUS_KM = 6371.0


def _round_up(x, m):
    return ((x + m - 1) // m) * m


def _haversine_kernel(consts_ref, x_ref, out_ref):
    # consts_ref: SMEM f32[4] = [lat_scale, lat_off, lon_scale, lon_off]
    #             (deg2rad already folded in).
    # x_ref:      VMEM f32[4, block_rows, 128] = [t_lat, t_lon, p_lat, p_lon].
    # out_ref:    VMEM f32[1, 8, 128] per-block partial sums (km).
    lat_scale = consts_ref[0]
    lat_off = consts_ref[1]
    lon_scale = consts_ref[2]
    lon_off = consts_ref[3]

    t_lat = x_ref[0]
    t_lon = x_ref[1]
    p_lat = x_ref[2]
    p_lon = x_ref[3]

    half_pi = jnp.float32(np.pi / 2.0)
    pi = jnp.float32(np.pi)

    # Denormalize + clamp, directly in radians (deg2rad folded into consts).
    lat1 = jnp.clip(t_lat * lat_scale + lat_off, -half_pi, half_pi)
    lon1 = jnp.clip(t_lon * lon_scale + lon_off, -pi, pi)
    lat2 = jnp.clip(p_lat * lat_scale + lat_off, -half_pi, half_pi)
    lon2 = jnp.clip(p_lon * lon_scale + lon_off, -pi, pi)

    sin_dlat = jnp.sin((lat2 - lat1) * 0.5)
    sin_dlon = jnp.sin((lon2 - lon1) * 0.5)
    a = sin_dlat * sin_dlat + jnp.cos(lat1) * jnp.cos(lat2) * sin_dlon * sin_dlon
    # fp rounding can push `a` slightly above 1 -> sqrt(1-a) = NaN without this.
    a = jnp.clip(a, 0.0, 1.0)
    c = 2.0 * jnp.arctan2(jnp.sqrt(a), jnp.sqrt(1.0 - a))
    dist = jnp.float32(_EARTH_RADIUS_KM) * c  # (block_rows, 128), km

    rows = dist.shape[0]  # static, multiple of 8 by construction
    # Tile-aligned fold to one (8,128) slab: elementwise vreg adds, unmasked
    # lane-dense store.
    out_ref[0] = jnp.sum(
        dist.reshape(rows // _SUBLANES, _SUBLANES, _LANES), axis=0)


@functools.partial(jax.jit, static_argnames=("block_rows",))
def haversine_loss(preds, targets, lat_mean, lon_mean, lat_std, lon_std,
                   *, block_rows=512):
    """preds/targets: [B, 2] normalized (lat, lon). Returns scalar f32 mean km."""
    B = preds.shape[0]
    assert preds.shape == (B, 2) and targets.shape == (B, 2)
    assert block_rows % _SUBLANES == 0

    rows_needed = -(-B // _LANES)                           # cdiv(B, 128)
    blk = min(block_rows, _round_up(rows_needed, _SUBLANES))  # rows per grid step
    R = _round_up(rows_needed, blk)
    num_blocks = R // blk
    B_pad = R * _LANES

    preds = jnp.asarray(preds, jnp.float32)
    targets = jnp.asarray(targets, jnp.float32)

    # Single layout pass (fused under jit): split columns, zero-pad the tail
    # (zeros contribute exactly 0 km), reshape to sublane/lane-dense (R, 128)
    # slabs, stack as (4, R, 128).
    def slab(col):
        return jnp.pad(col, (0, B_pad - B)).reshape(R, _LANES)

    x = jnp.stack([slab(targets[:, 0]), slab(targets[:, 1]),
                   slab(preds[:, 0]), slab(preds[:, 1])], axis=0)

    d2r = np.float32(np.pi / 180.0)
    consts = jnp.stack([
        jnp.asarray(lat_std, jnp.float32) * d2r,
        jnp.asarray(lat_mean, jnp.float32) * d2r,
        jnp.asarray(lon_std, jnp.float32) * d2r,
        jnp.asarray(lon_mean, jnp.float32) * d2r,
    ])

    partials = pl.pallas_call(
        _haversine_kernel,
        out_shape=jax.ShapeDtypeStruct((num_blocks, _SUBLANES, _LANES),
                                       jnp.float32),
        grid=(num_blocks,),
        in_specs=[
            pl.BlockSpec(memory_space=pltpu.MemorySpace.SMEM),       # consts
            pl.BlockSpec((4, blk, _LANES), lambda i: (0, i, 0)),     # data slab
        ],
        out_specs=pl.BlockSpec((1, _SUBLANES, _LANES), lambda i: (i, 0, 0)),
        compiler_params=pltpu.CompilerParams(
            dimension_semantics=("parallel",)),
        cost_estimate=pl.CostEstimate(
            flops=30 * B_pad,
            transcendentals=7 * B_pad,
            bytes_accessed=4 * 4 * B_pad + 4 * num_blocks * _SUBLANES * _LANES + 16),
    )(consts, x)

    # Tiny final reduction outside the kernel; divide by the TRUE batch size.
    return jnp.sum(partials) / jnp.float32(B)


def _reference(preds, targets, lat_mean, lon_mean, lat_std, lon_std):
    R = 6371.0
    p_lat = jnp.clip(preds[:, 0] * lat_std + lat_mean, -90.0, 90.0)
    p_lon = jnp.clip(preds[:, 1] * lon_std + lon_mean, -180.0, 180.0)
    t_lat = jnp.clip(targets[:, 0] * lat_std + lat_mean, -90.0, 90.0)
    t_lon = jnp.clip(targets[:, 1] * lon_std + lon_mean, -180.0, 180.0)
    d2r = np.pi / 180.0
    lat1, lon1 = t_lat * d2r, t_lon * d2r
    lat2, lon2 = p_lat * d2r, p_lon * d2r
    dlat, dlon = lat2 - lat1, lon2 - lon1
    a = jnp.sin(dlat / 2) ** 2 + jnp.cos(lat1) * jnp.cos(lat2) * jnp.sin(dlon / 2) ** 2
    c = 2 * jnp.arctan2(jnp.sqrt(a), jnp.sqrt(1 - a))
    return jnp.mean(R * c)


if __name__ == "__main__":
    lat_mean, lon_mean = 37.77, -122.42
    lat_std, lon_std = 10.0, 20.0

    key = jax.random.PRNGKey(0)
    k1, k2, k3, k4, k5, k6 = jax.random.split(key, 6)

    # Case 1: small batch (B=8) -> single grid step.
    preds8 = jax.random.normal(k1, (8, 2), dtype=jnp.float32)
    targets8 = jax.random.normal(k2, (8, 2), dtype=jnp.float32)
    loss8 = jax.block_until_ready(
        haversine_loss(preds8, targets8, lat_mean, lon_mean, lat_std, lon_std))
    ref8 = _reference(preds8, targets8, lat_mean, lon_mean, lat_std, lon_std)
    np.testing.assert_allclose(np.asarray(loss8), np.asarray(ref8),
                               rtol=2e-5, atol=1e-2)

    # Case 2: B=130 (not a multiple of 128) -> exercises zero-padded tail.
    preds130 = jax.random.normal(k3, (130, 2), dtype=jnp.float32)
    targets130 = jax.random.normal(k4, (130, 2), dtype=jnp.float32)
    loss130 = jax.block_until_ready(
        haversine_loss(preds130, targets130, lat_mean, lon_mean, lat_std, lon_std))
    ref130 = _reference(preds130, targets130, lat_mean, lon_mean, lat_std, lon_std)
    np.testing.assert_allclose(np.asarray(loss130), np.asarray(ref130),
                               rtol=2e-5, atol=1e-2)

    # Case 3: multi-block grid (block_rows=8 forces num_blocks > 1) exercising
    # the pipelined / "parallel" partial-sum path.
    preds2k = jax.random.normal(k5, (2000, 2), dtype=jnp.float32)
    targets2k = jax.random.normal(k6, (2000, 2), dtype=jnp.float32)
    loss2k = jax.block_until_ready(
        haversine_loss(preds2k, targets2k, lat_mean, lon_mean, lat_std, lon_std,
                       block_rows=8))
    ref2k = _reference(preds2k, targets2k, lat_mean, lon_mean, lat_std, lon_std)
    np.testing.assert_allclose(np.asarray(loss2k), np.asarray(ref2k),
                               rtol=2e-5, atol=1e-2)

    print("KERNEL_OK")
</pallas_src>

<mosaic_0001>
module attributes {stable_mosaic.version = 11 : i64} {
  func.func @_haversine_kernel(%arg0: i32, %arg1: memref<4xf32, #tpu.memory_space<smem>>, %arg2: memref<4x8x128xf32, #tpu.memory_space<vmem>>, %arg3: memref<1x8x128xf32, #tpu.memory_space<vmem>>) attributes {dimension_semantics = [#tpu.dimension_semantics<parallel>], iteration_bounds = array<i64: 1>, scalar_prefetch = 0 : i64, scratch_operands = 0 : i64, tpu.core_type = #tpu.core_type<tc>, window_params = [{transform_indices = @transform_0, window_bounds = array<i64: 4>}, {transform_indices = @transform_1, window_bounds = array<i64: 4, 8, 128>}, {transform_indices = @transform_2, window_bounds = array<i64: 1, 8, 128>}]} {
    %c0 = arith.constant 0 : index
    %0 = memref.load %arg1[%c0] : memref<4xf32, #tpu.memory_space<smem>>
    %c1 = arith.constant 1 : index
    %1 = memref.load %arg1[%c1] : memref<4xf32, #tpu.memory_space<smem>>
    %c2 = arith.constant 2 : index
    %2 = memref.load %arg1[%c2] : memref<4xf32, #tpu.memory_space<smem>>
    %c3 = arith.constant 3 : index
    %3 = memref.load %arg1[%c3] : memref<4xf32, #tpu.memory_space<smem>>
    %c0_0 = arith.constant 0 : index
    %c0_1 = arith.constant 0 : index
    %c0_2 = arith.constant 0 : index
    %4 = vector.load %arg2[%c0_0, %c0_1, %c0_2] : memref<4x8x128xf32, #tpu.memory_space<vmem>>, vector<1x8x128xf32>
    %5 = vector.shape_cast %4 : vector<1x8x128xf32> to vector<8x128xf32>
    %c1_3 = arith.constant 1 : index
    %c0_4 = arith.constant 0 : index
    %c0_5 = arith.constant 0 : index
    %6 = vector.load %arg2[%c1_3, %c0_4, %c0_5] : memref<4x8x128xf32, #tpu.memory_space<vmem>>, vector<1x8x128xf32>
    %7 = vector.shape_cast %6 : vector<1x8x128xf32> to vector<8x128xf32>
    %c2_6 = arith.constant 2 : index
    %c0_7 = arith.constant 0 : index
    %c0_8 = arith.constant 0 : index
    %8 = vector.load %arg2[%c2_6, %c0_7, %c0_8] : memref<4x8x128xf32, #tpu.memory_space<vmem>>, vector<1x8x128xf32>
    %9 = vector.shape_cast %8 : vector<1x8x128xf32> to vector<8x128xf32>
    %c3_9 = arith.constant 3 : index
    %c0_10 = arith.constant 0 : index
    %c0_11 = arith.constant 0 : index
    %10 = vector.load %arg2[%c3_9, %c0_10, %c0_11] : memref<4x8x128xf32, #tpu.memory_space<vmem>>, vector<1x8x128xf32>
    %11 = vector.shape_cast %10 : vector<1x8x128xf32> to vector<8x128xf32>
    %12 = vector.broadcast %0 : f32 to vector<8x128xf32>
    %13 = arith.mulf %5, %12 : vector<8x128xf32>
    %14 = vector.broadcast %1 : f32 to vector<8x128xf32>
    %15 = arith.addf %13, %14 : vector<8x128xf32>
    %cst = arith.constant 0.000000e+00 : f32
    %cst_12 = arith.constant 1.57079637 : f32
    %16 = arith.subf %cst, %cst_12 : f32
    %cst_13 = arith.constant 1.57079637 : f32
    %17 = vector.broadcast %16 : f32 to vector<8x128xf32>
    %18 = arith.maximumf %17, %15 : vector<8x128xf32>
    %19 = vector.broadcast %cst_13 : f32 to vector<8x128xf32>
    %20 = arith.minimumf %19, %18 : vector<8x128xf32>
    %21 = vector.broadcast %2 : f32 to vector<8x128xf32>
    %22 = arith.mulf %7, %21 : vector<8x128xf32>
    %23 = vector.broadcast %3 : f32 to vector<8x128xf32>
    %24 = arith.addf %22, %23 : vector<8x128xf32>
    %cst_14 = arith.constant 0.000000e+00 : f32
    %cst_15 = arith.constant 3.14159274 : f32
    %25 = arith.subf %cst_14, %cst_15 : f32
    %cst_16 = arith.constant 3.14159274 : f32
    %26 = vector.broadcast %25 : f32 to vector<8x128xf32>
    %27 = arith.maximumf %26, %24 : vector<8x128xf32>
    %28 = vector.broadcast %cst_16 : f32 to vector<8x128xf32>
    %29 = arith.minimumf %28, %27 : vector<8x128xf32>
    %30 = vector.broadcast %0 : f32 to vector<8x128xf32>
    %31 = arith.mulf %9, %30 : vector<8x128xf32>
    %32 = vector.broadcast %1 : f32 to vector<8x128xf32>
    %33 = arith.addf %31, %32 : vector<8x128xf32>
    %cst_17 = arith.constant 0.000000e+00 : f32
    %cst_18 = arith.constant 1.57079637 : f32
    %34 = arith.subf %cst_17, %cst_18 : f32
    %cst_19 = arith.constant 1.57079637 : f32
    %35 = vector.broadcast %34 : f32 to vector<8x128xf32>
    %36 = arith.maximumf %35, %33 : vector<8x128xf32>
    %37 = vector.broadcast %cst_19 : f32 to vector<8x128xf32>
    %38 = arith.minimumf %37, %36 : vector<8x128xf32>
    %39 = vector.broadcast %2 : f32 to vector<8x128xf32>
    %40 = arith.mulf %11, %39 : vector<8x128xf32>
    %41 = vector.broadcast %3 : f32 to vector<8x128xf32>
    %42 = arith.addf %40, %41 : vector<8x128xf32>
    %cst_20 = arith.constant 0.000000e+00 : f32
    %cst_21 = arith.constant 3.14159274 : f32
    %43 = arith.subf %cst_20, %cst_21 : f32
    %cst_22 = arith.constant 3.14159274 : f32
    %44 = vector.broadcast %43 : f32 to vector<8x128xf32>
    %45 = arith.maximumf %44, %42 : vector<8x128xf32>
    %46 = vector.broadcast %cst_22 : f32 to vector<8x128xf32>
    %47 = arith.minimumf %46, %45 : vector<8x128xf32>
    %48 = arith.subf %38, %20 : vector<8x128xf32>
    %cst_23 = arith.constant 5.000000e-01 : f32
    %49 = vector.broadcast %cst_23 : f32 to vector<8x128xf32>
    %50 = arith.mulf %48, %49 : vector<8x128xf32>
    %51 = math.sin %50 : vector<8x128xf32>
    %52 = arith.subf %47, %29 : vector<8x128xf32>
    %cst_24 = arith.constant 5.000000e-01 : f32
    %53 = vector.broadcast %cst_24 : f32 to vector<8x128xf32>
    %54 = arith.mulf %52, %53 : vector<8x128xf32>
    %55 = math.sin %54 : vector<8x128xf32>
    %56 = arith.mulf %51, %51 : vector<8x128xf32>
    %57 = math.cos %20 : vector<8x128xf32>
    %58 = math.cos %38 : vector<8x128xf32>
    %59 = arith.mulf %57, %58 : vector<8x128xf32>
    %60 = arith.mulf %59, %55 : vector<8x128xf32>
    %61 = arith.mulf %60, %55 : vector<8x128xf32>
    %62 = arith.addf %56, %61 : vector<8x128xf32>
    %cst_25 = arith.constant 0.000000e+00 : f32
    %cst_26 = arith.constant 1.000000e+00 : f32
    %63 = vector.broadcast %cst_25 : f32 to vector<8x128xf32>
    %64 = arith.maximumf %63, %62 : vector<8x128xf32>
    %65 = vector.broadcast %cst_26 : f32 to vector<8x128xf32>
    %66 = arith.minimumf %65, %64 : vector<8x128xf32>
    %67 = math.sqrt %66 : vector<8x128xf32>
    %cst_27 = arith.constant 1.000000e+00 : f32
    %68 = vector.broadcast %cst_27 : f32 to vector<8x128xf32>
    %69 = arith.subf %68, %66 : vector<8x128xf32>
    %70 = math.sqrt %69 : vector<8x128xf32>
    %71 = math.atan2 %67, %70 : vector<8x128xf32>
    %cst_28 = arith.constant 2.000000e+00 : f32
    %72 = vector.broadcast %cst_28 : f32 to vector<8x128xf32>
    %73 = arith.mulf %72, %71 : vector<8x128xf32>
    %cst_29 = arith.constant 6.371000e+03 : f32
    %74 = vector.broadcast %cst_29 : f32 to vector<8x128xf32>
    %75 = arith.mulf %74, %73 : vector<8x128xf32>
    %76 = vector.shape_cast %75 : vector<8x128xf32> to vector<1x8x128xf32>
    %cst_30 = arith.constant dense<0.000000e+00> : vector<8x128xf32>
    %77 = vector.multi_reduction <add>, %76, %cst_30 [0] : vector<1x8x128xf32> to vector<8x128xf32>
    %c0_31 = arith.constant 0 : index
    %c0_32 = arith.constant 0 : index
    %c0_33 = arith.constant 0 : index
    %78 = vector.load %arg3[%c0_31, %c0_32, %c0_33] : memref<1x8x128xf32, #tpu.memory_space<vmem>>, vector<1x8x128xf32>
    %79 = vector.shape_cast %78 : vector<1x8x128xf32> to vector<8x128xf32>
    %80 = vector.shape_cast %77 : vector<8x128xf32> to vector<1x8x128xf32>
    tpu.vector_store %arg3[%c0_31, %c0_32, %c0_33], %80 {strides = array<i32>} : memref<1x8x128xf32, #tpu.memory_space<vmem>>, vector<1x8x128xf32>,
    return
  }
  func.func @transform_0(%arg0: i32) -> i32 {
    %c0_i32 = arith.constant 0 : i32
    %c0_i32_0 = arith.constant 0 : i32
    return %c0_i32 : i32
  }
  func.func @transform_1(%arg0: i32) -> (i32, i32, i32) {
    %c0_i32 = arith.constant 0 : i32
    %c0_i32_0 = arith.constant 0 : i32
    %c0_i32_1 = arith.constant 0 : i32
    return %c0_i32, %arg0, %c0_i32_0 : i32, i32, i32
  }
  func.func @transform_2(%arg0: i32) -> (i32, i32, i32) {
    %c0_i32 = arith.constant 0 : i32
    %c0_i32_0 = arith.constant 0 : i32
    %c0_i32_1 = arith.constant 0 : i32
    return %arg0, %c0_i32, %c0_i32_0 : i32, i32, i32
  }
}

</mosaic_0001>

<bundles_post_ra>
// kernel: haversine_loss.1
= control target key start
LH: loop header
LB: loop body
LE: loop exit
PB: predicated region body
PF: predicated region fallthrough
CT: control target
= control target key end

     0   :  { %7 = vsyncpa [#allocation3], 0  ;;  %s969_s0 = inlined_call_operand.vmem [shape: f32[4], index: 0, kind: input, shape index: {}]   ;;  %s970_s1 = inlined_call_operand.vmem [shape: f32[4,8,128], index: 1, kind: input, shape index: {}]   ;;  %s971_s2 = inlined_call_operand.vmem [shape: f32[1,8,128], index: 2, kind: output, shape index: {}]  }
   0x1   :  { %s14_s11 = sshll.u32 %s969_s0, 4  ;;  %s15_s11 = int_to_ptr.vmem [resolvable:$true] %s14_s11 }
   0x2   :  { %s624_s12 = scalar_lea.vmem %s15_s11, 16  ;;  %p629_p1 = scmp.lt.s32.totalorder %s15_s11, %s15_s11 }
   0x3   :  { %p625_p0 = scmp.ne.s32.totalorder %s15_s11, %s624_s12  ;;  %p630_p2 = scmp.lt.s32.totalorder %s624_s12, %s624_s12 }
   0x5   :  { %p631_p3 = por %p630_p2, %p629_p1 }
   0x7   :  { %p632_p4 = pnand %p631_p3, %p625_p0 }
   0x9   :  { %635 = shalt.err (!%p632_p4)
}
   0xa   :  { %s638_s13 = smov [#allocation2]  }
   0xb   :  { %17 = dma.vmem_to_smem %s15_s11, 16, %s638_s13, [#allocation3]  }
   0xc   :  { %636 = dma.done.wait [#allocation3], 16  }
   0xd   :  { %637 = vsyncadd [#allocation3], 4294967280 }
   0xe   :  { %23 = sfence }
   0xf   :  { %s24_s14 = sld [smem:[#allocation2]]  ;;  %s551_s15 = sld [smem:[#allocation2 + $0x1]]  ;;  %v28_v0 = vld [vmem:[%s970_s1] sm:$0xff]  ;;  %v555_v1 = vld [vmem:[%s970_s1 + $0x10] sm:$0xff]  ;;  %v554_v2 = vld [vmem:[%s970_s1 + $0x8] sm:$0xff] }
  0x10   :  { %s552_s16 = sld [smem:[#allocation2 + $0x2]]  ;;  %s553_s17 = sld [smem:[#allocation2 + $0x3]]  ;;  %v556_v3 = vld [vmem:[%s970_s1 + $0x18] sm:$0xff]  ;;  %v639_v55 = vmov 683565275  }
  0x11   :  { %v640_v57 = vmov 2475754826   ;;  %v641_v59 = vmov 2131351028   ;;  %v642_v61 = vmov 2102212464  }
  0x12   :  { %v643_v63 = vmov 920167782  }
  0x15   :  { %v35_v4 = vstv %s24_s14  ;;  %v37_v5 = vstv %s551_s15 }
  0x16   :  { %v36_v6 = vmul.f32 %v35_v4, %v28_v0  ;;  %v41_v7 = vstv %s552_s16  ;;  %v43_v8 = vstv %s553_s17  ;;  %v47_v9 = vmul.f32 %v555_v1, %v35_v4 }
  0x17   :  { %v42_v10 = vmul.f32 %v554_v2, %v41_v7  ;;  %v51_v11 = vmul.f32 %v556_v3, %v41_v7  ;;  %v644_v7 = vmov 1326507024  }
  0x18   :  { %v38_v12 = vadd.f32 %v37_v5, %v36_v6  ;;  %v48_v13 = vadd.f32 %v47_v9, %v37_v5 }
  0x19   :  { %v44_v14 = vadd.f32 %v43_v8, %v42_v10  ;;  %v52_v15 = vadd.f32 %v51_v11, %v43_v8 }
  0x1a   :  { %v677_v16 = vclamps-f32 %v38_v12, 1.5707964  ;;  %v679_v17 = vclamps-f32 %v48_v13, 1.5707964 }
  0x1b   :  { %v558_v18 = vclamps-f32 %v44_v14, 3.1415927  ;;  %v560_v19 = vclamps-f32 %v52_v15, 3.1415927 }
  0x1c   :  { %v55_v20 = vsub.f32 %v679_v17, %v677_v16  ;;  %v271_v21 = vand.u32 2139095040, %v677_v16  ;;  %v268_v39 = vand.u32 2147483647, %v677_v16 }
  0x1d   :  { %v161_v22 = vsub.f32 %v560_v19, %v558_v18 }
  0x1e   :  { %v684_v23 = vmul.f32 0.5, %v55_v20  ;;  %v272_v24 = vshrl.u32 %v271_v21, 23  ;;  %v704_v49 = vand.u32 8388607, %v268_v39 }
  0x1f   :  { %v686_v25 = vmul.f32 0.5, %v161_v22 }
  0x20   :  { %v57_v26 = vand.u32 2147483647, %v684_v23  ;;  %v60_v27 = vand.u32 2139095040, %v684_v23  ;;  %v569_v31 = vadd.s32 4294967169, %v272_v24 }
  0x21   :  { %v163_v28 = vand.u32 2147483647, %v686_v25  ;;  %v166_v29 = vand.u32 2139095040, %v686_v25 }
  0x22   :  { %v61_v30 = vshrl.u32 %v60_v27, 23  ;;  %v64_v32 = vand.u32 8388607, %v57_v26  ;;  %v278_v36 = vadd.s32 1, %v569_v31 }
  0x23   :  { %v167_v33 = vshrl.u32 %v166_v29, 23  ;;  %v170_v34 = vand.u32 8388607, %v163_v28 }
  0x24   :  { %v561_v35 = vadd.s32 4294967169, %v61_v30  ;;  %vm279_vm0 = vcmp.gt.s32.totalorder %v278_v36, 0  ;;  %v65_v40 = vor.u32 8388608, %v64_v32 }
  0x25   :  { %v565_v37 = vadd.s32 4294967169, %v167_v33  ;;  %v171_v41 = vor.u32 8388608, %v170_v34  ;;  %v697_v43 = vsel %vm279_vm0, %v278_v36, 0 }
  0x26   :  { %v67_v38 = vadd.s32 1, %v561_v35  ;;  %v700_v44 = vand.u32 31, %v697_v43  ;;  %v706_v50 = vshll.u32 %v65_v40, 8 }
  0x27   :  { %v173_v42 = vadd.s32 1, %v565_v37  ;;  %v708_v52 = vshll.u32 %v171_v41, 8 }
  0x28   :  { %vm68_vm1 = vcmp.gt.s32.totalorder %v67_v38, 0  ;;  %v711_v53 = vsub.s32 32, %v700_v44 }
  0x29   :  { %v69_v45 = vsel %vm68_vm1, %v67_v38, 0  ;;  %vm174_vm2 = vcmp.gt.s32.totalorder %v173_v42, 0 }
  0x2a   :  { %v70_v46 = vshrl.u32 %v69_v45, 5  ;;  %v71_v47 = vand.u32 31, %v69_v45  ;;  %v175_v48 = vsel %vm174_vm2, %v173_v42, 0 }
  0x2b   :  { %v177_v51 = vand.u32 31, %v175_v48  ;;  %v718_v1 = vshrl.u32 %v175_v48, 5 }
  0x2c   :  { %v72_v54 = vsub.s32 32, %v71_v47  ;;  %v74_v56 = vshll.u32 %v639_v55, %v71_v47  ;;  %v77_v58 = vshll.u32 %v640_v57, %v71_v47  ;;  %v80_v60 = vshll.u32 %v641_v59, %v71_v47 }
  0x2d   :  { %v83_v62 = vshll.u32 %v642_v61, %v71_v47  ;;  %v86_v0 = vshll.u32 %v643_v63, %v71_v47  ;;  %vm89_vm3 = vcmp.lt.s32.totalorder %v70_v46, 1  ;;  %vm90_vm4 = vcmp.lt.s32.totalorder %v70_v46, 2 }
  0x2e   :  { %v73_v2 = vshrl.u32 %v639_v55, %v72_v54  ;;  %v75_v3 = vshrl.u32 %v640_v57, %v72_v54  ;;  %v78_v4 = vshrl.u32 %v641_v59, %v72_v54  ;;  %v81_v5 = vshrl.u32 %v642_v61, %v72_v54 }
  0x2f   :  { %v84_v6 = vshrl.u32 %v643_v63, %v72_v54  ;;  %v87_v8 = vshrl.u32 %v644_v7, %v72_v54  ;;  %vm92_vm5 = vcmp.lt.s32.totalorder %v70_v46, 4  ;;  %v178_v12 = vsub.s32 32, %v177_v51 }
  0x30   :  { %v76_v9 = vor.u32 %v75_v3, %v74_v56  ;;  %v79_v10 = vor.u32 %v78_v4, %v77_v58  ;;  %v82_v11 = vor.u32 %v81_v5, %v80_v60  ;;  %vm91_vm6 = vcmp.lt.s32.totalorder %v70_v46, 3 }
  0x31   :  { %v85_v13 = vor.u32 %v84_v6, %v83_v62  ;;  %v88_v14 = vor.u32 %v87_v8, %v86_v0  ;;  %v180_v15 = vshll.u32 %v639_v55, %v177_v51  ;;  %v183_v29 = vshll.u32 %v640_v57, %v177_v51 }
  0x32   :  { %v93_v18 = vsel %vm89_vm3, %v73_v2, %v76_v9  ;;  %v94_v19 = vsel %vm92_vm5, %v82_v11, 2102212464  ;;  %v97_v20 = vsel %vm89_vm3, %v76_v9, %v79_v10  ;;  %v101_v21 = vsel %vm89_vm3, %v79_v10, %v82_v11 }
  0x33   :  { %v95_v22 = vsel %vm91_vm6, %v79_v10, %v94_v19  ;;  %v98_v24 = vsel %vm92_vm5, %v85_v13, 920167782  ;;  %v102_v27 = vsel %vm92_vm5, %v88_v14, 1326507024  ;;  %v179_v32 = vshrl.u32 %v639_v55, %v178_v12 }
  0x34   :  { %v99_v30 = vsel %vm91_vm6, %v82_v11, %v98_v24  ;;  %v103_v31 = vsel %vm91_vm6, %v85_v13, %v102_v27  ;;  %v181_v33 = vshrl.u32 %v640_v57, %v178_v12  ;;  %v96_v34 = vsel %vm90_vm4, %v93_v18, %v95_v22 }
  0x35   :  { %v100_v35 = vsel %vm90_vm4, %v97_v20, %v99_v30  ;;  %v104_v36 = vsel %vm90_vm4, %v101_v21, %v103_v31  ;;  %v184_v37 = vshrl.u32 %v641_v59, %v178_v12  ;;  %v186_v48 = vshll.u32 %v641_v59, %v177_v51 }
  0x36   :  { %v738_v38 = vmul.u32.u64.low %v706_v50, %v104_v36  ;;  %v739_v40 = vmul.u32.u64.high %v706_v50, %v104_v36, %v738_v38  ;;  %v742_v41 = vmul.u32.u64.low %v706_v50, %v100_v35  ;;  %v743_v42 = vmul.u32.u64.high %v706_v50, %v100_v35, %v742_v41 }
  0x37   :  { %v182_v45 = vor.u32 %v181_v33, %v180_v15  ;;  %v185_v47 = vor.u32 %v184_v37, %v183_v29  ;;  %v187_v54 = vshrl.u32 %v642_v61, %v178_v12  ;;  %v189_v46 = vshll.u32 %v642_v61, %v177_v51 }
  0x38   :  { %v190_v56 = vshrl.u32 %v643_v63, %v178_v12  ;;  %v192_v58 = vshll.u32 %v643_v63, %v177_v51  ;;  %v193_v60 = vshrl.u32 %v644_v7, %v178_v12  ;;  %v112_v62 = vmul.u32 %v706_v50, %v96_v34 }
  0x39   :  { %v188_v0 = vor.u32 %v187_v54, %v186_v48  ;;  %vm195_vm7 = vcmp.lt.s32.totalorder %v718_v1, 1  ;;  %vm196_vm8 = vcmp.lt.s32.totalorder %v718_v1, 2  ;;  %vm114_vm9 = vc.u32 %v739_v40, %v742_v41 }
  0x3a   :  { %v115_v2 = vadd.s32 1, %v743_v42  ;;  %v191_v3 = vor.u32 %v190_v56, %v189_v46  ;;  %vm197_vm10 = vcmp.lt.s32.totalorder %v718_v1, 3  ;;  %v194_v4 = vor.u32 %v193_v60, %v192_v58 }
  0x3b   :  { %vm198_vm11 = vcmp.lt.s32.totalorder %v718_v1, 4  ;;  %v199_v51 = vsel %vm195_vm7, %v179_v32, %v182_v45  ;;  %v203_v5 = vsel %vm195_vm7, %v182_v45, %v185_v47  ;;  %v207_v9 = vsel %vm195_vm7, %v185_v47, %v188_v0 }
  0x3c   :  { %v116_v50 = vsel %vm114_vm9, %v115_v2, %v743_v42  ;;  %v200_v6 = vsel %vm198_vm11, %v188_v0, 2102212464  ;;  %v204_v8 = vsel %vm198_vm11, %v191_v3, 920167782  ;;  %v208_v13 = vsel %vm198_vm11, %v194_v4, 1326507024 }
  0x3d   :  { %v117_v10 = vadd.s32 %v116_v50, %v112_v62  ;;  %v201_v11 = vsel %vm197_vm10, %v185_v47, %v200_v6  ;;  %v205_v12 = vsel %vm197_vm10, %v188_v0, %v204_v8  ;;  %v209_v18 = vsel %vm197_vm10, %v191_v3, %v208_v13 }
  0x3e   :  { %v202_v14 = vsel %vm196_vm8, %v199_v51, %v201_v11  ;;  %v206_v15 = vsel %vm196_vm8, %v203_v5, %v205_v12  ;;  %v374_v19 = vand.u32 2139095040, %v679_v17  ;;  %v210_v21 = vsel %vm196_vm8, %v207_v9, %v209_v18 }
  0x3f   :  { %v118_v20 = vadd.s32 536870912, %v117_v10  ;;  %v769_v22 = vmul.u32.u64.low %v708_v52, %v206_v15  ;;  %v770_v24 = vmul.u32.u64.high %v708_v52, %v206_v15, %v769_v22  ;;  %v285_v30 = vshll.u32 %v639_v55, %v700_v44 }
  0x40   :  { %v774_v27 = vmul.u32.u64.low %v708_v52, %v210_v21  ;;  %v775_v29 = vmul.u32.u64.high %v708_v52, %v210_v21, %v774_v27  ;;  %v286_v31 = vshrl.u32 %v640_v57, %v711_v53  ;;  %v218_v32 = vmul.u32 %v708_v52, %v202_v14 }
  0x41   :  { %v281_v1 = vshrl.u32 %v697_v43, 5  ;;  %v288_v33 = vshll.u32 %v640_v57, %v700_v44  ;;  %v289_v34 = vshrl.u32 %v641_v59, %v711_v53  ;;  %v291_v35 = vshll.u32 %v641_v59, %v700_v44 }
  0x42   :  { %v292_v36 = vshrl.u32 %v642_v61, %v711_v53  ;;  %v294_v37 = vshll.u32 %v642_v61, %v700_v44  ;;  %v295_v52 = vshrl.u32 %v643_v63, %v711_v53  ;;  %v795_v38 = vshrl.u32 %v118_v20, 30 }
  0x43   :  { %v221_v43 = vadd.s32 1, %v770_v24  ;;  %v375_v42 = vshrl.u32 %v374_v19, 23  ;;  %vm220_vm12 = vc.u32 %v775_v29, %v769_v22  ;;  %v276_v45 = vor.u32 8388608, %v704_v49 }
  0x44   :  { %v287_v47 = vor.u32 %v286_v31, %v285_v30  ;;  %v297_v48 = vshll.u32 %v643_v63, %v700_v44  ;;  %v290_v46 = vor.u32 %v289_v34, %v288_v33  ;;  %v296_v56 = vor.u32 %v295_v52, %v294_v37 }
  0x45   :  { %v222_v54 = vsel %vm220_vm12, %v221_v43, %v770_v24  ;;  %v298_v58 = vshrl.u32 %v644_v7, %v711_v53  ;;  %v293_v62 = vor.u32 %v292_v36, %v291_v35  ;;  %vm300_vm13 = vcmp.lt.s32.totalorder %v281_v1, 1 }
  0x46   :  { %v223_v60 = vadd.s32 %v222_v54, %v218_v32  ;;  %v120_v0 = vshll.u32 %v795_v38, 30  ;;  %vm302_vm14 = vcmp.lt.s32.totalorder %v281_v1, 3  ;;  %v573_v2 = vadd.s32 4294967169, %v375_v42 }
  0x47   :  { %vm303_vm15 = vcmp.lt.s32.totalorder %v281_v1, 4  ;;  %v316_v49 = vshll.u32 %v276_v45, 8  ;;  %v299_v4 = vor.u32 %v298_v58, %v297_v48  ;;  %vm301_vm0 = vcmp.lt.s32.totalorder %v281_v1, 2 }
  0x48   :  { %v224_v3 = vadd.s32 536870912, %v223_v60  ;;  %v308_v44 = vsel %vm300_vm13, %v287_v47, %v290_v46  ;;  %v309_v51 = vsel %vm303_vm15, %v296_v56, 920167782  ;;  %v284_v50 = vshrl.u32 %v639_v55, %v711_v53 }
  0x49   :  { %v310_v6 = vsel %vm302_vm14, %v293_v62, %v309_v51  ;;  %v813_v8 = vsub.s32 %v117_v10, %v120_v0  ;;  %v305_v9 = vsel %vm303_vm15, %v293_v62, 2102212464  ;;  %v381_v11 = vadd.s32 1, %v573_v2 }
  0x4a   :  { %v808_v5 = vshrl.u32 %v224_v3, 30  ;;  %v311_v12 = vsel %vm301_vm0, %v308_v44, %v310_v6  ;;  %v312_v13 = vsel %vm300_vm13, %v290_v46, %v293_v62  ;;  %v313_v15 = vsel %vm303_vm15, %v299_v4, 1326507024 }
  0x4b   :  { %v818_v18 = vmul.u32.u64.low %v316_v49, %v311_v12  ;;  %v819_v19 = vmul.u32.u64.high %v316_v49, %v311_v12, %v818_v18  ;;  %v304_v20 = vsel %vm300_vm13, %v284_v50, %v287_v47  ;;  %v306_v53 = vsel %vm302_vm14, %v290_v46, %v305_v9 }
  0x4c   :  { %v226_v14 = vshll.u32 %v808_v5, 30  ;;  %v314_v10 = vsel %vm302_vm14, %v296_v56, %v313_v15  ;;  %v123_v21 = vsub.s32 0, %v813_v8  ;;  %vm382_vm1 = vcmp.gt.s32.totalorder %v381_v11, 0 }
  0x4d   :  { %v315_v24 = vsel %vm301_vm0, %v312_v13, %v314_v10  ;;  %v307_v30 = vsel %vm301_vm0, %v304_v20, %v306_v53  ;;  %v383_v31 = vsel %vm382_vm1, %v381_v11, 0  ;;  %v326_v35 = vadd.s32 1, %v819_v19 }
  0x4e   :  { %v827_v27 = vsub.s32 %v223_v60, %v226_v14  ;;  %v830_v32 = vmul.u32.u64.low %v316_v49, %v315_v24  ;;  %v831_v33 = vmul.u32.u64.high %v316_v49, %v315_v24, %v830_v32  ;;  %v562_v34 = vmin.u32 %v123_v21, %v813_v8 }
  0x4f   :  { %v323_v36 = vmul.u32 %v316_v49, %v307_v30  ;;  %v385_v37 = vand.u32 31, %v383_v31  ;;  %v371_v48 = vand.u32 2147483647, %v679_v17  ;;  %v384_v4 = vshrl.u32 %v383_v31, 5 }
  0x50   :  { %v229_v52 = vsub.s32 0, %v827_v27  ;;  %vm325_vm2 = vc.u32 %v831_v33, %v818_v18  ;;  %v125_v43 = vclz %v562_v34  ;;  %v113_v32 = vadd.s32 %v742_v41, %v739_v40 }
  0x51   :  { %v327_v42 = vsel %vm325_vm2, %v326_v35, %v819_v19  ;;  %v386_v45 = vsub.s32 32, %v385_v37  ;;  %v388_v56 = vshll.u32 %v639_v55, %v385_v37  ;;  %v391_v58 = vshll.u32 %v640_v57, %v385_v37 }
  0x52   :  { %v328_v1 = vadd.s32 %v327_v42, %v323_v36  ;;  %v566_v47 = vmin.u32 %v229_v52, %v827_v27  ;;  %v563_v46 = vadd.s32 4294967294, %v125_v43  ;;  %v397_v2 = vshll.u32 %v642_v61, %v385_v37 }
  0x53   :  { %v389_v62 = vshrl.u32 %v640_v57, %v386_v45  ;;  %v392_v0 = vshrl.u32 %v641_v59, %v386_v45  ;;  %v378_v49 = vand.u32 8388607, %v371_v48  ;;  %v398_v44 = vshrl.u32 %v643_v63, %v386_v45 }
  0x54   :  { %v329_v54 = vadd.s32 536870912, %v328_v1  ;;  %v231_v3 = vclz %v566_v47  ;;  %v394_v50 = vshll.u32 %v641_v59, %v385_v37  ;;  %v395_v6 = vshrl.u32 %v642_v61, %v386_v45 }
  0x55   :  { %vm564_vm3 = vcmp.lt.s32.totalorder %v563_v46, 0  ;;  %v400_v57 = vshll.u32 %v643_v63, %v385_v37  ;;  %v401_v9 = vshrl.u32 %v644_v7, %v386_v45  ;;  %v390_v12 = vor.u32 %v389_v62, %v388_v56 }
  0x56   :  { %v843_v60 = vshrl.u32 %v329_v54, 30  ;;  %v393_v13 = vor.u32 %v392_v0, %v391_v58  ;;  %v399_v14 = vor.u32 %v398_v44, %v397_v2  ;;  %v567_v15 = vadd.s32 4294967294, %v231_v3 }
  0x57   :  { %v379_v19 = vor.u32 8388608, %v378_v49  ;;  %vm403_vm4 = vcmp.lt.s32.totalorder %v384_v4, 1  ;;  %v128_v20 = vsel %vm564_vm3, 0, %v563_v46  ;;  %v387_v59 = vshrl.u32 %v639_v55, %v386_v45 }
  0x58   :  { %v331_v51 = vshll.u32 %v843_v60, 30  ;;  %v396_v10 = vor.u32 %v395_v6, %v394_v50  ;;  %v402_v61 = vor.u32 %v401_v9, %v400_v57  ;;  %vm404_vm5 = vcmp.lt.s32.totalorder %v384_v4, 2 }
  0x59   :  { %vm405_vm6 = vcmp.lt.s32.totalorder %v384_v4, 3  ;;  %vm406_vm7 = vcmp.lt.s32.totalorder %v384_v4, 4  ;;  %v411_v21 = vsel %vm403_vm4, %v390_v12, %v393_v13  ;;  %v133_v30 = vsub.s32 4294967266, %v128_v20 }
  0x5a   :  { %v856_v11 = vsub.s32 %v328_v1, %v331_v51  ;;  %v408_v7 = vsel %vm406_vm7, %v396_v10, 2102212464  ;;  %v412_v24 = vsel %vm406_vm7, %v399_v14, 920167782  ;;  %vm568_vm8 = vcmp.lt.s32.totalorder %v567_v15, 0 }
  0x5b   :  { %v419_v31 = vshll.u32 %v379_v19, 8  ;;  %v407_v55 = vsel %vm403_vm4, %v387_v59, %v390_v12  ;;  %v413_v35 = vsel %vm405_vm6, %v396_v10, %v412_v24  ;;  %v409_v36 = vsel %vm405_vm6, %v393_v13, %v408_v7 }
  0x5c   :  { %v334_v53 = vsub.s32 0, %v856_v11  ;;  %v414_v37 = vsel %vm404_vm5, %v411_v21, %v413_v35  ;;  %v415_v52 = vsel %vm403_vm4, %v393_v13, %v396_v10  ;;  %v416_v43 = vsel %vm406_vm7, %v402_v61, 1326507024 }
  0x5d   :  { %v129_v42 = vsub.s32 32, %v128_v20  ;;  %v234_v1 = vsel %vm568_vm8, 0, %v567_v15  ;;  %v417_v47 = vsel %vm405_vm6, %v399_v14, %v416_v43  ;;  %v134_v54 = vadd.s32 127, %v133_v30 }
  0x5e   :  { %v570_v63 = vmin.u32 %v334_v53, %v856_v11  ;;  %v418_v40 = vsel %vm404_vm5, %v415_v52, %v417_v47  ;;  %v871_v41 = vmul.u32.u64.low %v419_v31, %v414_v37  ;;  %v872_v46 = vmul.u32.u64.high %v419_v31, %v414_v37, %v871_v41 }
  0x5f   :  { %v410_v56 = vsel %vm404_vm5, %v407_v55, %v409_v36  ;;  %v875_v58 = vmul.u32.u64.low %v419_v31, %v418_v40  ;;  %v876_v62 = vmul.u32.u64.high %v419_v31, %v418_v40, %v875_v58  ;;  %v239_v0 = vsub.s32 4294967266, %v234_v1 }
  0x60   :  { %v336_v34 = vclz %v570_v63  ;;  %v324_v49 = vadd.s32 %v818_v18, %v831_v33  ;;  %v426_v51 = vmul.u32 %v419_v31, %v410_v56  ;;  %v429_v50 = vadd.s32 1, %v872_v46 }
  0x61   :  { %v130_v6 = vshll.u32 %v813_v8, %v128_v20  ;;  %v131_v57 = vshrl.u32 %v113_v32, %v129_v42  ;;  %v135_v9 = vshll.u32 %v134_v54, 23  ;;  %v219_v4 = vadd.s32 %v769_v22, %v775_v29 }
  0x62   :  { %v571_v45 = vadd.s32 4294967294, %v336_v34  ;;  %v235_v13 = vsub.s32 32, %v234_v1  ;;  %v240_v14 = vadd.s32 127, %v239_v0  ;;  %vm428_vm10 = vc.u32 %v876_v62, %v871_v41 }
  0x63   :  { %v430_v15 = vsel %vm428_vm10, %v429_v50, %v872_v46  ;;  %v132_v59 = vor.u32 %v131_v57, %v130_v6  ;;  %v136_v10 = vor.u32 4788187, %v135_v9  ;;  %v236_v8 = vshll.u32 %v827_v27, %v234_v1 }
  0x64   :  { %vm572_vm9 = vcmp.lt.s32.totalorder %v571_v45, 0  ;;  %v431_v53 = vadd.s32 %v430_v15, %v426_v51  ;;  %v237_v20 = vshrl.u32 %v219_v4, %v235_v13  ;;  %v241_v61 = vshll.u32 %v240_v14, 23 }
  0x65   :  { %v339_v2 = vsel %vm572_vm9, 0, %v571_v45  ;;  %v139_v21 = vcvt.s32.f32 %v132_v59  ;;  %v137_v24 = vand.u32 2147483647, %v136_v10  ;;  %vm59_vm11 = vcmp.lt.s32.totalorder %v684_v23, 0 }
  0x66   :  { %v344_v3 = vsub.s32 4294967266, %v339_v2  ;;  %v340_v44 = vsub.s32 32, %v339_v2  ;;  %v341_v18 = vshll.u32 %v856_v11, %v339_v2  ;;  %v432_v63 = vadd.s32 536870912, %v431_v53 }
  0x67   :  { %v238_v30 = vor.u32 %v237_v20, %v236_v8  ;;  %v242_v31 = vor.u32 4788187, %v241_v61  ;;  %v140_v35 = vmul.f32 %v139_v21, %v137_v24  ;;  %vm894_vm12 = vcmp.le.f32.partialorder %v57_v26, 0.7853982 }
  0x68   :  { %v345_v12 = vadd.s32 127, %v344_v3  ;;  %v342_v33 = vshrl.u32 %v324_v49, %v340_v44  ;;  %v888_v29 = vshrl.u32 %v432_v63, 30  ;;  %vm270_vm13 = vcmp.lt.s32.totalorder %v677_v16, 0 }
  0x69   :  { %v243_v36 = vand.u32 2147483647, %v242_v31  ;;  %v245_v37 = vcvt.s32.f32 %v238_v30  ;;  %v141_v42 = vxor.u32 2147483648, %v140_v35  ;;  %v427_v58 = vadd.s32 %v871_v41, %v876_v62 }
  0x6a   :  { %v346_v19 = vshll.u32 %v345_v12, 23  ;;  %v343_v7 = vor.u32 %v342_v33, %v341_v18  ;;  %v434_v11 = vshll.u32 %v888_v29, 30  ;;  %vm165_vm15 = vcmp.lt.s32.totalorder %v686_v25, 0 }
  0x6b   :  { %v246_v1 = vmul.f32 %v245_v37, %v243_v36  ;;  %v142_v46 = vsel %vm59_vm11, %v141_v42, %v140_v35  ;;  %vm905_vm0 = vcmp.le.f32.partialorder %v268_v39, 0.7853982  ;;  %vm916_vm1 = vcmp.le.f32.partialorder %v163_v28, 0.7853982 }
  0x6c   :  { %v347_v22 = vor.u32 4788187, %v346_v19  ;;  %v350_v34 = vcvt.s32.f32 %v343_v7  ;;  %v435_v55 = vsub.s32 %v431_v53, %v434_v11  ;;  %v145_v41 = vsel %vm894_vm12, %v684_v23, %v142_v46 }
  0x6d   :  { %v247_v56 = vxor.u32 2147483648, %v246_v1  ;;  %v143_v6 = vsub.s32 4, %v795_v38  ;;  %602 = vcosq.f32 %v145_v41  ;;  %v249_v28 = vsub.s32 4, %v808_v5 }
  0x6e   :  { %v348_v32 = vand.u32 2147483647, %v347_v22  ;;  %v437_v27 = vsub.s32 0, %v435_v55  ;;  %604 = vsinq.f32 %v145_v41  ;;  %v354_v18 = vsub.s32 4, %v843_v60 }
  0x6f   :  { %v248_v39 = vsel %vm165_vm15, %v247_v56, %v246_v1  ;;  %v144_v15 = vsel %vm59_vm11, %v143_v6, %v795_v38  ;;  %v250_v19 = vsel %vm165_vm15, %v249_v28, %v808_v5  ;;  %vm373_vm2 = vcmp.lt.s32.totalorder %v679_v17, 0 }
  0x70   :  { %v351_v52 = vmul.f32 %v350_v34, %v348_v32  ;;  %v574_v43 = vmin.u32 %v437_v27, %v435_v55  ;;  %v251_v4 = vsel %vm916_vm1, %v686_v25, %v248_v39  ;;  %v146_v53 = vsel %vm894_vm12, 0, %v144_v15 }
  0x71   :  { %v355_v10 = vsel %vm270_vm13, %v354_v18, %v843_v60  ;;  %v252_v38 = vsel %vm916_vm1, 0, %v250_v19  ;;  %vm947_vm3 = vcmp.le.f32.partialorder %v371_v48, 0.7853982  ;;  %v457_v20 = vsub.s32 4, %v888_v29 }
  0x72   :  { %v439_v45 = vclz %v574_v43  ;;  %v352_v47 = vxor.u32 2147483648, %v351_v52  ;;  %v150_v61 = vadd.s32 3, %v146_v53  ;;  %v357_v7 = vsel %vm905_vm0, 0, %v355_v10 }
  0x73   :  { %v256_v21 = vadd.s32 3, %v252_v38  ;;  %v458_v48 = vsel %vm373_vm2, %v457_v20, %v888_v29  ;;  %v361_v32 = vand.u32 3, %v357_v7  ;;  %vm255_vm1 = vweird.f32 %v686_v25 }
  0x74   :  { %v575_v54 = vadd.s32 4294967294, %v439_v45  ;;  %v353_v2 = vsel %vm270_vm13, %v352_v47, %v351_v52  ;;  %v151_v11 = vand.u32 3, %v150_v61  ;;  %v460_v36 = vsel %vm947_vm3, 0, %v458_v48 }
  0x75   :  { %v356_v57 = vsel %vm905_vm0, %v677_v16, %v353_v2  ;;  %v257_v35 = vand.u32 3, %v256_v21  ;;  %vm363_vm5 = vcmp.eq.s32.totalorder %v361_v32, 0  ;;  %vm366_vm6 = vcmp.eq.s32.totalorder %v361_v32, 2 }
  0x76   :  { %vm576_vm14 = vcmp.lt.s32.totalorder %v575_v54, 0  ;;  %606 = vcosq.f32 %v356_v57  ;;  %vm156_vm4 = vcmp.eq.s32.totalorder %v151_v11, 2  ;;  %v464_v1 = vand.u32 3, %v460_v36 }
  0x77   :  { %v442_v26 = vsel %vm576_vm14, 0, %v575_v54  ;;  %608 = vsinq.f32 %v356_v57  ;;  %v603_v63 = vpop.eup %602  ;;  %vm153_vm7 = vcmp.eq.s32.totalorder %v151_v11, 0  ;;  %vm259_vm8 = vcmp.eq.s32.totalorder %v257_v35, 0 }
  0x78   :  { %v443_v3 = vsub.s32 32, %v442_v26  ;;  %v444_v49 = vshll.u32 %v435_v55, %v442_v26  ;;  %v447_v44 = vsub.s32 4294967266, %v442_v26  ;;  %610 = vcosq.f32 %v251_v4  ;;  %v605_v22 = vpop.eup %604 }
  0x79   :  { %612 = vsinq.f32 %v251_v4  ;;  %v157_v52 = vxor.u32 2147483648, %v603_v63  ;;  %v154_v43 = vxor.u32 2147483648, %v605_v22  ;;  %vm262_vm9 = vcmp.eq.s32.totalorder %v257_v35, 2 }
  0x7a   :  { %v445_v51 = vshrl.u32 %v427_v58, %v443_v3  ;;  %v448_v50 = vadd.s32 127, %v447_v44  ;;  %vm362_vm10 = vcmp.lt.s32.totalorder %v361_v32, 2  ;;  %vm152_vm11 = vcmp.lt.s32.totalorder %v151_v11, 2 }
  0x7b   :  { %v158_v54 = vsel %vm156_vm4, %v157_v52, %v605_v22  ;;  %vm258_vm12 = vcmp.lt.s32.totalorder %v257_v35, 2  ;;  %v155_v46 = vsel %vm153_vm7, %v603_v63, %v154_v43  ;;  %vm469_vm13 = vcmp.eq.s32.totalorder %v464_v1, 2 }
  0x7c   :  { %v446_v9 = vor.u32 %v445_v51, %v444_v49  ;;  %v449_v12 = vshll.u32 %v448_v50, 23  ;;  %vm360_vm14 = vweird.f32 %v677_v16  ;;  %vm466_vm15 = vcmp.eq.s32.totalorder %v464_v1, 0 }
  0x7d   :  { %vm149_vm0 = vweird.f32 %v684_v23  ;;  %v159_v49 = vsel %vm152_vm11, %v155_v46, %v158_v54  ;;  %v646_v46 = vmov 0.7853982  }
  0x7e   :  { %v450_v13 = vor.u32 4788187, %v449_v12  ;;  %v453_v14 = vcvt.s32.f32 %v446_v9  ;;  %v160_v16 = vsel %vm149_vm0, nan, %v159_v49 }
  0x7f   :  { %v267_v9 = vmul.f32 %v160_v16, %v160_v16 }
  0x80   :  { %v451_v33 = vand.u32 2147483647, %v450_v13  ;;  %v607_v30 = vpop.eup %606 }
  0x81   :  { %v609_v31 = vpop.eup %608  ;;  %v367_v27 = vxor.u32 2147483648, %v607_v30 }
  0x82   :  { %v454_v59 = vmul.f32 %v453_v14, %v451_v33  ;;  %v611_v34 = vpop.eup %610  ;;  %v364_v37 = vxor.u32 2147483648, %v609_v31 }
  0x83   :  { %v613_v55 = vpop.eup %612  ;;  %v263_v29 = vxor.u32 2147483648, %v611_v34  ;;  %v368_v47 = vsel %vm366_vm6, %v367_v27, %v609_v31 }
  0x84   :  { %v455_v5 = vxor.u32 2147483648, %v454_v59  ;;  %v260_v42 = vxor.u32 2147483648, %v613_v55  ;;  %v365_v45 = vsel %vm363_vm5, %v607_v30, %v364_v37 }
  0x85   :  { %v264_v58 = vsel %vm262_vm9, %v263_v29, %v613_v55  ;;  %v369_v26 = vsel %vm362_vm10, %v365_v45, %v368_v47  ;;  %v645_v47 = vmov 0.0  }
  0x86   :  { %v456_v60 = vsel %vm373_vm2, %v455_v5, %v454_v59  ;;  %v261_v56 = vsel %vm259_vm8, %v611_v34, %v260_v42  ;;  %vm465_vm2 = vcmp.lt.s32.totalorder %v464_v1, 2  ;;  %v370_v62 = vsel %vm360_vm14, nan, %v369_v26 }
  0x87   :  { %v459_v24 = vsel %vm947_vm3, %v679_v17, %v456_v60  ;;  %v265_v44 = vsel %vm258_vm12, %v261_v56, %v264_v58  ;;  %vm463_vm3 = vweird.f32 %v679_v17 }
  0x88   :  { %614 = vcosq.f32 %v459_v24  ;;  %v266_v50 = vsel %vm255_vm1, nan, %v265_v44 }
  0x89   :  { %616 = vsinq.f32 %v459_v24 }
  0x92   :  { %v615_v40 = vpop.eup %614 }
  0x93   :  { %v617_v0 = vpop.eup %616  ;;  %v470_v2 = vxor.u32 2147483648, %v615_v40 }
  0x94   :  { %v467_v3 = vxor.u32 2147483648, %v617_v0 }
  0x95   :  { %v471_v41 = vsel %vm469_vm13, %v470_v2, %v617_v0 }
  0x96   :  { %v468_v39 = vsel %vm466_vm15, %v615_v40, %v467_v3 }
  0x97   :  { %v472_v51 = vsel %vm465_vm2, %v468_v39, %v471_v41 }
  0x98   :  { %v473_v6 = vsel %vm463_vm3, nan, %v472_v51 }
  0x99   :  { %v474_v57 = vmul.f32 %v473_v6, %v370_v62 }
  0x9b   :  { %v475_v23 = vmul.f32 %v474_v57, %v266_v50 }
  0x9d   :  { %v476_v12 = vmul.f32 %v475_v23, %v266_v50 }
  0x9f   :  { %v477_v25 = vadd.f32 %v476_v12, %v267_v9 }
  0xa1   :  { %v478_v28 = vmax.f32 %v477_v25, 0.0 }
  0xa3   :  { %v479_v4 = vmin.f32 %v478_v28, 1.0 }
  0xa5   :  { %618 = vrsqrt.f32 %v479_v4  ;;  %v487_v13 = vsub.f32 1.0, %v479_v4  ;;  %vm482_vm4 = vcmp.eq.f32.partialorder %v479_v4, inf  ;;  %v485_v17 = vand.u32 2147483648, %v479_v4 }
  0xa6   :  { %vm484_vm5 = vcmp.eq.f32.partialorder %v479_v4, 0.0 }
  0xa7   :  { %620 = vrsqrt.f32 %v487_v13  ;;  %vm490_vm6 = vcmp.eq.f32.partialorder %v487_v13, inf  ;;  %v493_v19 = vand.u32 2147483648, %v487_v13  ;;  %vm492_vm7 = vcmp.eq.f32.partialorder %v487_v13, 0.0 }
  0xaf   :  { %v619_v14 = vpop.eup %618 }
  0xb0   :  { %v481_v15 = vmul.f32 %v619_v14, %v479_v4 }
  0xb1   :  { %v621_v18 = vpop.eup %620 }
  0xb2   :  { %v483_v33 = vsel %vm482_vm4, %v479_v4, %v481_v15  ;;  %v489_v59 = vmul.f32 %v621_v18, %v487_v13 }
  0xb3   :  { %v486_v53 = vsel %vm484_vm5, %v485_v17, %v483_v33 }
  0xb4   :  { %v491_v10 = vsel %vm490_vm6, %v487_v13, %v489_v59  ;;  %v496_v38 = vand.u32 2147483647, %v486_v53  ;;  %vm530_vm11 = vcmp.ne.f32.partialorder %v486_v53, %v486_v53  ;;  %vm527_vm15 = vcmp.eq.f32.partialorder %v486_v53, 0.0 }
  0xb5   :  { %v494_v8 = vsel %vm492_vm7, %v493_v19, %v491_v10  ;;  %v540_v26 = vand.u32 2147483648, %v486_v53 }
  0xb6   :  { %v495_v5 = vand.u32 2147483647, %v494_v8  ;;  %vm525_vm9 = vcmp.lt.s32.totalorder %v494_v8, 0  ;;  %vm529_vm10 = vcmp.ne.f32.partialorder %v494_v8, %v494_v8  ;;  %vm522_vm12 = vcmp.lt.f32.partialorder %v494_v8, 0.0 }
  0xb7   :  { %vm536_vm14 = vcmp.eq.s32.totalorder %v496_v38, inf  ;;  %v526_v54 = vsel %vm525_vm9, 3.1415927, %v645_v47  ;;  %vm531_vm0 = vmor %vm529_vm10, %vm530_vm11  ;;  %v534_v56 = vsel %vm522_vm12, 2.3561945, %v646_v46 }
  0xb8   :  { %v498_v20 = vmax.f32 %v495_v5, %v496_v38  ;;  %v497_v61 = vmin.f32 %v495_v5, %v496_v38  ;;  %vm519_vm8 = vcmp.gt.f32.partialorder %v496_v38, %v495_v5  ;;  %vm535_vm13 = vcmp.eq.s32.totalorder %v495_v5, inf }
  0xb9   :  { %vm537_vm1 = vmand %vm535_vm13, %vm536_vm14 }
  0xba   :  { %622 = vrcp.f32 %v498_v20 }
  0xc4   :  { %v623_v63 = vpop.eup %622 }
  0xc5   :  { %v500_v7 = vmul.f32 %v623_v63, %v497_v61 }
  0xc7   :  { %v501_v60 = vmul.f32 %v500_v7, %v500_v7 }
  0xc9   :  { %v502_v22 = vmul.f32 0.002785687, %v501_v60 }
  0xcb   :  { %v503_v21 = vadd.f32 -0.015866, %v502_v22 }
  0xcd   :  { %v504_v24 = vmul.f32 %v503_v21, %v501_v60 }
  0xcf   :  { %v505_v30 = vadd.f32 0.04247222, %v504_v24 }
  0xd1   :  { %v506_v48 = vmul.f32 %v505_v30, %v501_v60 }
  0xd3   :  { %v507_v31 = vadd.f32 -0.074975304, %v506_v48 }
  0xd5   :  { %v508_v11 = vmul.f32 %v507_v31, %v501_v60 }
  0xd7   :  { %v509_v32 = vadd.f32 0.1064488, %v508_v11 }
  0xd9   :  { %v510_v34 = vmul.f32 %v509_v32, %v501_v60 }
  0xdb   :  { %v511_v55 = vadd.f32 -0.14207031, %v510_v34 }
  0xdd   :  { %v512_v35 = vmul.f32 %v511_v55, %v501_v60 }
  0xdf   :  { %v513_v36 = vadd.f32 0.19993454, %v512_v35 }
  0xe1   :  { %v514_v37 = vmul.f32 %v513_v36, %v501_v60 }
  0xe3   :  { %v515_v27 = vadd.f32 -0.33333147, %v514_v37 }
  0xe5   :  { %v516_v52 = vmul.f32 %v515_v27, %v501_v60 }
  0xe7   :  { %v517_v43 = vmul.f32 %v516_v52, %v500_v7 }
  0xe9   :  { %v518_v42 = vadd.f32 %v517_v43, %v500_v7 }
  0xeb   :  { %v520_v29 = vsub.f32 1.5707964, %v518_v42 }
  0xed   :  { %v521_v1 = vsel %vm519_vm8, %v520_v29, %v518_v42 }
  0xee   :  { %v523_v45 = vsub.f32 3.1415927, %v521_v1 }
  0xf0   :  { %v524_v40 = vsel %vm522_vm12, %v523_v45, %v521_v1 }
  0xf1   :  { %v528_v58 = vsel %vm527_vm15, %v526_v54, %v524_v40 }
  0xf2   :  { %v532_v0 = vsel %vm531_vm0, nan, %v528_v58 }
  0xf3   :  { %v538_v2 = vsel %vm537_vm1, %v534_v56, %v532_v0 }
  0xf4   :  { %v539_v3 = vand.u32 2147483647, %v538_v2 }
  0xf6   :  { %v541_v49 = vor.u32 %v540_v26, %v539_v3 }
  0xf8   :  { %v542_v44 = vmul.f32 2.0, %v541_v49 }
  0xfa   :  { %v543_v41 = vmul.f32 6371.0, %v542_v44 }
  0xfc   :  { %545 = vst [vmem:[%s971_s2] sm:$0xff] %v543_v41 }
  0xfd   :  { %550 = vsyncpa [#allocation3], 1 }

</bundles_post_ra>
